<compile_context>
chip_gen: v7x
topology: tpu7x:2x2x1
jax: 0.10.0
libtpu: 0.0.40
codegen_flags: <defaults>
</compile_context>

<pallas_src>
import math
import functools

import jax
import jax.numpy as jnp
from jax.experimental import pallas as pl
from jax.experimental.pallas import tpu as pltpu


# -----------------------------------------------------------------------------
# Kernel 1: CenterNet focal loss, per-block lane-wise partial sums.
#   out[i] = [pos_loss_partial, neg_loss_partial, num_pos_partial]  (each (128,))
# Grid axis is "parallel" (megacore-shardable on v7x); final reduce in JAX.
# -----------------------------------------------------------------------------
def _focal_kernel(x_ref, g_ref, out_ref):
    x = x_ref[...]                                   # (tile_r, 128) f32
    gt = g_ref[...]
    # _sigmoid(): clamp(sigmoid(x), 1e-4, 1 - 1e-4)
    pred = jnp.clip(jax.nn.sigmoid(x), 1e-4, 1.0 - 1e-4)
    pos = (gt == 1.0).astype(jnp.float32)
    neg = (gt < 1.0).astype(jnp.float32)             # padded gt == 2.0 -> neither
    neg_w = (1.0 - gt) ** 4
    pos_loss = jnp.log(pred) * (1.0 - pred) ** 2 * pos
    neg_loss = jnp.log(1.0 - pred) * pred * pred * neg_w * neg
    part = jnp.concatenate(
        [jnp.sum(pos_loss, axis=0, keepdims=True),
         jnp.sum(neg_loss, axis=0, keepdims=True),
         jnp.sum(pos, axis=0, keepdims=True)], axis=0)            # (3, 128)
    out_ref[0] = part


def focal_loss(hm_logits, hm_gt):
    LANES = 128
    x = hm_logits.reshape(-1).astype(jnp.float32)
    g = hm_gt.reshape(-1).astype(jnp.float32)
    total = x.shape[0]
    rows = (total + LANES - 1) // LANES
    # big tiles (overhead-amortized), but never larger than the (8-padded) data
    tile_r = min(512, ((rows + 7) // 8) * 8)
    nblk = (rows + tile_r - 1) // tile_r
    pad_elems = nblk * tile_r * LANES - total
    if pad_elems:
        x = jnp.pad(x, (0, pad_elems))
        # gt = 2.0 -> pos mask 0 and neg mask 0 -> exactly zero contribution
        g = jnp.pad(g, (0, pad_elems), constant_values=2.0)
    x2 = x.reshape(nblk * tile_r, LANES)
    g2 = g.reshape(nblk * tile_r, LANES)

    parts = pl.pallas_call(
        _focal_kernel,
        grid=(nblk,),
        in_specs=[pl.BlockSpec((tile_r, LANES), lambda i: (i, 0)),
                  pl.BlockSpec((tile_r, LANES), lambda i: (i, 0))],
        out_specs=pl.BlockSpec((1, 3, LANES), lambda i: (i, 0, 0)),
        out_shape=jax.ShapeDtypeStruct((nblk, 3, LANES), jnp.float32),
        compiler_params=pltpu.CompilerParams(
            dimension_semantics=("parallel",)),
    )(x2, g2)

    pos_sum = jnp.sum(parts[:, 0, :])
    neg_sum = jnp.sum(parts[:, 1, :])
    num_pos = jnp.sum(parts[:, 2, :])
    return jnp.where(num_pos == 0.0, -neg_sum,
                     -(pos_sum + neg_sum) / jnp.maximum(num_pos, 1.0))


# -----------------------------------------------------------------------------
# Kernel 2 (fused): DMA-gather of the B*K object columns straight from the
# NCHW heads in HBM, then RegL1(wh) + RegL1(reg) + ID branch (normalize,
# bf16 MXU classifier, CE with ignore_index=-1).
# Outputs (SMEM): [wh_abs, wh_cnt, reg_abs, reg_cnt, ce_sum, valid_cnt]
# -----------------------------------------------------------------------------
def _reg_id_kernel(ind_ref, wh_hbm, reg_hbm, id_hbm,
                   wh_t_ref, reg_t_ref, mask_ref, ids_ref, w_ref, b_ref,
                   out_ref, whg, regg, idg, sems,
                   *, K, HW, C, E, N, emb_scale, window):
    # ---- phase 1: windowed strided-DMA gather (heads stay NCHW in HBM) ------
    def start_row(n, slot):
        b = n // K
        s = jnp.clip(ind_ref[n], 0, HW - 1)          # bounds-safe gather index
        pltpu.make_async_copy(wh_hbm.at[pl.ds(b * C, C), pl.ds(s, 1)],
                              whg.at[:, pl.ds(n, 1)], sems.at[slot, 0]).start()
        pltpu.make_async_copy(reg_hbm.at[pl.ds(b * C, C), pl.ds(s, 1)],
                              regg.at[:, pl.ds(n, 1)], sems.at[slot, 1]).start()
        pltpu.make_async_copy(id_hbm.at[pl.ds(b * E, E), pl.ds(s, 1)],
                              idg.at[:, pl.ds(n, 1)], sems.at[slot, 2]).start()

    def wait_row(n, slot):
        pltpu.make_async_copy(wh_hbm.at[pl.ds(0, C), pl.ds(0, 1)],
                              whg.at[:, pl.ds(n, 1)], sems.at[slot, 0]).wait()
        pltpu.make_async_copy(reg_hbm.at[pl.ds(0, C), pl.ds(0, 1)],
                              regg.at[:, pl.ds(n, 1)], sems.at[slot, 1]).wait()
        pltpu.make_async_copy(id_hbm.at[pl.ds(0, E), pl.ds(0, 1)],
                              idg.at[:, pl.ds(n, 1)], sems.at[slot, 2]).wait()

    for w in range(window):                  # prime the DMA window (small, static)
        start_row(w, w)

    def body(n, carry):
        slot = n % window
        wait_row(n, slot)

        @pl.when(n + window < N)
        def _():
            start_row(n + window, slot)
        return carry

    jax.lax.fori_loop(0, N, body, 0)

    # ---- phase 2: masked L1 sums, lane-dense over the N objects -------------
    m = mask_ref[...]                                     # (1, N)
    wh_abs = jnp.sum(jnp.abs((whg[...] - wh_t_ref[...]) * m))
    reg_abs = jnp.sum(jnp.abs((regg[...] - reg_t_ref[...]) * m))
    cnt = jnp.sum(m) * float(C)                           # mask expanded over C

    # ---- phase 3: ID branch --------------------------------------------------
    x = idg[...]                                          # (E, N) f32
    col_norm = jnp.sqrt(jnp.sum(x * x, axis=0, keepdims=True))
    xn = emb_scale * x / jnp.maximum(col_norm, 1e-12)     # emb_scale * F.normalize
    # bf16 MXU matmul with f32 accumulation; contracts the E axis of (E, N).
    # TODO(synk): for production nID (~10k+) tile over nID with an online
    #             logsumexp instead of materializing the full (N, nID) logits.
    logits = jax.lax.dot_general(
        xn.astype(jnp.bfloat16), w_ref[...],
        dimension_numbers=(((0,), (0,)), ((), ())),
        preferred_element_type=jnp.float32) + b_ref[...]  # (N, nID)
    t = ids_ref[...]                                      # (N, 1) i32, -1 = ignore
    valid = (t >= 0).astype(jnp.float32)
    mx = jnp.max(logits, axis=-1, keepdims=True)
    lse = mx + jnp.log(jnp.sum(jnp.exp(logits - mx), axis=-1, keepdims=True))
    col = jax.lax.broadcasted_iota(jnp.int32, logits.shape, 1)
    t_safe = jnp.where(t >= 0, t, 0)
    tgt = jnp.sum(jnp.where(col == t_safe, logits, 0.0), axis=-1, keepdims=True)
    ce = (lse - tgt) * valid

    out_ref[0] = wh_abs
    out_ref[1] = cnt
    out_ref[2] = reg_abs
    out_ref[3] = cnt
    out_ref[4] = jnp.sum(ce)
    out_ref[5] = jnp.sum(valid)


def fused_reg_id_losses(wh_nchw, reg_nchw, id_nchw, ind, reg_mask,
                        wh_target, reg_target, eff_ids, cls_w, cls_b, emb_scale):
    B, C, H, W = wh_nchw.shape
    E = id_nchw.shape[1]
    HW = H * W
    K = ind.shape[1]
    N = B * K
    nID = cls_w.shape[1]
    window = max(1, min(8, N))

    # Free reshapes: heads stay in HBM as (B*C, H*W); no NCHW->NHWC transpose.
    wh2 = wh_nchw.reshape(B * C, HW).astype(jnp.float32)
    reg2 = reg_nchw.reshape(B * C, HW).astype(jnp.float32)
    id2 = id_nchw.reshape(B * E, HW).astype(jnp.float32)

    kernel = functools.partial(_reg_id_kernel, K=K, HW=HW, C=C, E=E, N=N,
                               emb_scale=emb_scale, window=window)
    sums = pl.pallas_call(
        kernel,
        grid=(1,),
        in_specs=[
            pl.BlockSpec(memory_space=pltpu.MemorySpace.SMEM),   # ind (N,) i32
            pl.BlockSpec(memory_space=pl.ANY),                   # wh head (HBM)
            pl.BlockSpec(memory_space=pl.ANY),                   # reg head (HBM)
            pl.BlockSpec(memory_space=pl.ANY),                   # id head (HBM)
            pl.BlockSpec((C, N), lambda i: (0, 0)),              # wh target  (C, N)
            pl.BlockSpec((C, N), lambda i: (0, 0)),              # reg target (C, N)
            pl.BlockSpec((1, N), lambda i: (0, 0)),              # mask (1, N)
            pl.BlockSpec((N, 1), lambda i: (0, 0)),              # ids  (N, 1)
            pl.BlockSpec((E, nID), lambda i: (0, 0)),            # classifier W (bf16)
            pl.BlockSpec((1, nID), lambda i: (0, 0)),            # classifier b
        ],
        out_specs=pl.BlockSpec(memory_space=pltpu.MemorySpace.SMEM),
        out_shape=jax.ShapeDtypeStruct((6,), jnp.float32),
        scratch_shapes=[
            pltpu.VMEM((C, N), jnp.float32),                     # gathered wh
            pltpu.VMEM((C, N), jnp.float32),                     # gathered reg
            pltpu.VMEM((E, N), jnp.float32),                     # gathered id emb
            pltpu.SemaphoreType.DMA((window, 3)),
        ],
        compiler_params=pltpu.CompilerParams(
            dimension_semantics=("arbitrary",)),
    )(
        ind.reshape(N).astype(jnp.int32),
        wh2, reg2, id2,
        jnp.transpose(wh_target.reshape(N, C)).astype(jnp.float32),
        jnp.transpose(reg_target.reshape(N, C)).astype(jnp.float32),
        reg_mask.reshape(1, N).astype(jnp.float32),
        eff_ids.reshape(N, 1).astype(jnp.int32),
        cls_w.astype(jnp.bfloat16),
        cls_b.reshape(1, nID).astype(jnp.float32),
    )
    wh_loss = sums[0] / (sums[1] + 1e-4)
    off_loss = sums[2] / (sums[3] + 1e-4)
    id_loss = sums[4] / jnp.maximum(sums[5], 1.0)
    return wh_loss, off_loss, id_loss


# -----------------------------------------------------------------------------
# MotLoss forward (glue in plain JAX around the kernels)
# -----------------------------------------------------------------------------
def mot_loss_forward(outputs, batch, params, opt):
    num_stacks = opt["num_stacks"]
    emb_scale = math.sqrt(2) * math.log(opt["nID"] - 1)
    hm_loss = wh_loss = off_loss = id_loss = 0.0

    for s in range(num_stacks):
        out = outputs[s]
        hm_loss = hm_loss + focal_loss(out["hm"], batch["hm"]) / num_stacks

        eff_ids = jnp.where(batch["reg_mask"] > 0, batch["ids"], -1)
        wh_l, off_l, id_l = fused_reg_id_losses(
            out["wh"], out["reg"], out["id"], batch["ind"], batch["reg_mask"],
            batch["wh"], batch["reg"], eff_ids,
            params["cls_w"], params["cls_b"], emb_scale)
        if opt["wh_weight"] > 0:
            wh_loss = wh_loss + wh_l / num_stacks
        if opt["reg_offset"] and opt["off_weight"] > 0:
            off_loss = off_loss + off_l / num_stacks
        if opt["id_weight"] > 0:
            id_loss = id_loss + id_l

    det_loss = (opt["hm_weight"] * hm_loss + opt["wh_weight"] * wh_loss
                + opt["off_weight"] * off_loss)
    loss = (jnp.exp(-params["s_det"]) * det_loss
            + jnp.exp(-params["s_id"]) * id_loss
            + (params["s_det"] + params["s_id"]))
    loss = loss * 0.5
    stats = {"loss": loss, "hm_loss": hm_loss, "wh_loss": wh_loss,
             "off_loss": off_loss, "id_loss": id_loss}
    return loss, stats


# -----------------------------------------------------------------------------
# Pure-JAX reference (mirrors the PyTorch math) for a correctness check
# -----------------------------------------------------------------------------
def _ref_gather(feat_nchw, ind):
    B, C, H, W = feat_nchw.shape
    f = jnp.transpose(feat_nchw, (0, 2, 3, 1)).reshape(B, H * W, C)
    return jnp.take_along_axis(f, ind[:, :, None], axis=1)  # (B, K, C)


def mot_loss_reference(outputs, batch, params, opt):
    num_stacks = opt["num_stacks"]
    emb_scale = math.sqrt(2) * math.log(opt["nID"] - 1)
    hm_loss = wh_loss = off_loss = id_loss = 0.0
    for s in range(num_stacks):
        out = outputs[s]
        pred = jnp.clip(jax.nn.sigmoid(out["hm"]), 1e-4, 1.0 - 1e-4)
        gt = batch["hm"]
        pos = (gt == 1.0).astype(jnp.float32)
        neg = (gt < 1.0).astype(jnp.float32)
        pos_l = jnp.sum(jnp.log(pred) * (1 - pred) ** 2 * pos)
        neg_l = jnp.sum(jnp.log(1 - pred) * pred ** 2 * (1 - gt) ** 4 * neg)
        npos = jnp.sum(pos)
        hm_loss = hm_loss + jnp.where(npos == 0, -neg_l,
                                      -(pos_l + neg_l) / jnp.maximum(npos, 1.0)) / num_stacks

        def reg_l1(feat, target):
            p = _ref_gather(feat, batch["ind"])
            m = batch["reg_mask"][:, :, None].astype(jnp.float32) * jnp.ones_like(p)
            return jnp.sum(jnp.abs(p * m - target * m)) / (jnp.sum(m) + 1e-4)

        wh_loss = wh_loss + reg_l1(out["wh"], batch["wh"]) / num_stacks
        off_loss = off_loss + reg_l1(out["reg"], batch["reg"]) / num_stacks

        head = _ref_gather(out["id"], batch["ind"]).reshape(-1, opt["reid_dim"])
        norm = jnp.sqrt(jnp.sum(head * head, axis=-1, keepdims=True))
        head = emb_scale * head / jnp.maximum(norm, 1e-12)
        logits = head @ params["cls_w"] + params["cls_b"]
        t = jnp.where(batch["reg_mask"] > 0, batch["ids"], -1).reshape(-1)
        valid = (t >= 0).astype(jnp.float32)
        lse = jax.scipy.special.logsumexp(logits, axis=-1)
        tgt_logit = jnp.take_along_axis(logits, jnp.where(t >= 0, t, 0)[:, None], axis=1)[:, 0]
        ce = jnp.sum((lse - tgt_logit) * valid) / jnp.maximum(jnp.sum(valid), 1.0)
        id_loss = id_loss + ce

    det_loss = (opt["hm_weight"] * hm_loss + opt["wh_weight"] * wh_loss
                + opt["off_weight"] * off_loss)
    loss = 0.5 * (jnp.exp(-params["s_det"]) * det_loss
                  + jnp.exp(-params["s_id"]) * id_loss
                  + (params["s_det"] + params["s_id"]))
    return loss, {"hm_loss": hm_loss, "wh_loss": wh_loss,
                  "off_loss": off_loss, "id_loss": id_loss}


# -----------------------------------------------------------------------------
if __name__ == "__main__":
    OPT = dict(num_stacks=1, hm_weight=1.0, wh_weight=0.1, off_weight=1.0,
               id_weight=1.0, reg_offset=True, reid_dim=32, nID=128)

    B, H, W = 2, 32, 32
    K = 8
    E = OPT["reid_dim"]
    nID = OPT["nID"]
    HW = H * W

    key = jax.random.PRNGKey(0)
    ks = jax.random.split(key, 12)

    # model outputs (single stack), NCHW like the PyTorch heads
    outputs = [dict(
        hm=jax.random.normal(ks[0], (B, 1, H, W), jnp.float32),
        wh=jax.random.normal(ks[1], (B, 2, H, W), jnp.float32),
        reg=jax.random.normal(ks[2], (B, 2, H, W), jnp.float32),
        id=jax.random.normal(ks[3], (B, E, H, W), jnp.float32),
    )]

    # ground-truth batch
    ind = jax.random.randint(ks[4], (B, K), 0, HW, dtype=jnp.int32)
    reg_mask = jnp.array([[1, 1, 1, 1, 1, 0, 0, 0],
                          [1, 1, 1, 0, 0, 0, 0, 0]], dtype=jnp.float32)
    ids = jax.random.randint(ks[5], (B, K), 0, nID, dtype=jnp.int32)
    hm_gt = jax.random.uniform(ks[6], (B, HW), jnp.float32) ** 4
    for b in range(B):
        for k in range(K):
            if float(reg_mask[b, k]) > 0:
                hm_gt = hm_gt.at[b, int(ind[b, k])].set(1.0)   # exact peaks (gt == 1)
    batch = dict(
        hm=hm_gt.reshape(B, 1, H, W),
        ind=ind,
        reg_mask=reg_mask,
        ids=ids,
        wh=jax.random.uniform(ks[7], (B, K, 2), jnp.float32) * 4.0,
        reg=jax.random.uniform(ks[8], (B, K, 2), jnp.float32),
    )

    # MotLoss parameters (emulates nn.Linear(E, nID) + s_det/s_id)
    bound = 1.0 / math.sqrt(E)
    params = dict(
        cls_w=jax.random.uniform(ks[9], (E, nID), jnp.float32, -bound, bound),
        cls_b=jax.random.uniform(ks[10], (1, nID), jnp.float32, -bound, bound),
        s_det=jnp.full((1,), -1.85, jnp.float32),
        s_id=jnp.full((1,), -1.05, jnp.float32),
    )

    loss, stats = mot_loss_forward(outputs, batch, params, OPT)
    loss = jax.block_until_ready(loss)

    loss_ref, stats_ref = mot_loss_reference(outputs, batch, params, OPT)
    assert bool(jnp.allclose(loss, loss_ref, rtol=1e-2, atol=1e-2)), (loss, loss_ref)
    for name in ("hm_loss", "wh_loss", "off_loss", "id_loss"):
        assert bool(jnp.allclose(stats[name], stats_ref[name], rtol=1e-2, atol=1e-2)), (
            name, stats[name], stats_ref[name])

    print("KERNEL_OK")
</pallas_src>

<mosaic_0001>
module attributes {stable_mosaic.version = 11 : i64} {
  func.func @_focal_kernel(%arg0: i32, %arg1: memref<16x128xf32, #tpu.memory_space<vmem>>, %arg2: memref<16x128xf32, #tpu.memory_space<vmem>>, %arg3: memref<1x3x128xf32, #tpu.memory_space<vmem>>) attributes {dimension_semantics = [#tpu.dimension_semantics<parallel>], iteration_bounds = array<i64: 1>, scalar_prefetch = 0 : i64, scratch_operands = 0 : i64, tpu.core_type = #tpu.core_type<tc>, window_params = [{transform_indices = @transform_0, window_bounds = array<i64: 16, 128>}, {transform_indices = @transform_1, window_bounds = array<i64: 16, 128>}, {transform_indices = @transform_2, window_bounds = array<i64: 1, 3, 128>}]} {
    %c0 = arith.constant 0 : index
    %c0_0 = arith.constant 0 : index
    %0 = vector.load %arg1[%c0, %c0_0] : memref<16x128xf32, #tpu.memory_space<vmem>>, vector<16x128xf32>
    %c0_1 = arith.constant 0 : index
    %c0_2 = arith.constant 0 : index
    %1 = vector.load %arg2[%c0_1, %c0_2] : memref<16x128xf32, #tpu.memory_space<vmem>>, vector<16x128xf32>
    %2 = arith.negf %0 : vector<16x128xf32>
    %3 = math.exp %2 : vector<16x128xf32>
    %cst = arith.constant 1.000000e+00 : f32
    %4 = vector.broadcast %cst : f32 to vector<16x128xf32>
    %5 = arith.addf %4, %3 : vector<16x128xf32>
    %6 = arith.divf %4, %5 : vector<16x128xf32>
    %cst_3 = arith.constant 9.99999974E-5 : f32
    %cst_4 = arith.constant 0.999899983 : f32
    %7 = vector.broadcast %cst_3 : f32 to vector<16x128xf32>
    %8 = arith.maximumf %7, %6 : vector<16x128xf32>
    %9 = vector.broadcast %cst_4 : f32 to vector<16x128xf32>
    %10 = arith.minimumf %9, %8 : vector<16x128xf32>
    %cst_5 = arith.constant 1.000000e+00 : f32
    %11 = vector.broadcast %cst_5 : f32 to vector<16x128xf32>
    %12 = arith.cmpf oeq, %1, %11 : vector<16x128xf32>
    %13 = arith.extui %12 : vector<16x128xi1> to vector<16x128xi32>
    %14 = arith.sitofp %13 : vector<16x128xi32> to vector<16x128xf32>
    %cst_6 = arith.constant 1.000000e+00 : f32
    %15 = vector.broadcast %cst_6 : f32 to vector<16x128xf32>
    %16 = arith.cmpf olt, %1, %15 : vector<16x128xf32>
    %17 = arith.extui %16 : vector<16x128xi1> to vector<16x128xi32>
    %18 = arith.sitofp %17 : vector<16x128xi32> to vector<16x128xf32>
    %cst_7 = arith.constant 1.000000e+00 : f32
    %19 = vector.broadcast %cst_7 : f32 to vector<16x128xf32>
    %20 = arith.subf %19, %1 : vector<16x128xf32>
    %21 = arith.mulf %20, %20 : vector<16x128xf32>
    %22 = arith.mulf %21, %21 : vector<16x128xf32>
    %23 = math.log %10 : vector<16x128xf32>
    %cst_8 = arith.constant 1.000000e+00 : f32
    %24 = vector.broadcast %cst_8 : f32 to vector<16x128xf32>
    %25 = arith.subf %24, %10 : vector<16x128xf32>
    %26 = arith.mulf %25, %25 : vector<16x128xf32>
    %27 = arith.mulf %23, %26 : vector<16x128xf32>
    %28 = arith.mulf %27, %14 : vector<16x128xf32>
    %cst_9 = arith.constant 1.000000e+00 : f32
    %29 = vector.broadcast %cst_9 : f32 to vector<16x128xf32>
    %30 = arith.subf %29, %10 : vector<16x128xf32>
    %31 = math.log %30 : vector<16x128xf32>
    %32 = arith.mulf %31, %10 : vector<16x128xf32>
    %33 = arith.mulf %32, %10 : vector<16x128xf32>
    %34 = arith.mulf %33, %22 : vector<16x128xf32>
    %35 = arith.mulf %34, %18 : vector<16x128xf32>
    %cst_10 = arith.constant dense<0.000000e+00> : vector<128xf32>
    %36 = vector.multi_reduction <add>, %28, %cst_10 [0] : vector<16x128xf32> to vector<128xf32>
    %37 = vector.shape_cast %36 : vector<128xf32> to vector<1x128xf32>
    %cst_11 = arith.constant dense<0.000000e+00> : vector<128xf32>
    %38 = vector.multi_reduction <add>, %35, %cst_11 [0] : vector<16x128xf32> to vector<128xf32>
    %39 = vector.shape_cast %38 : vector<128xf32> to vector<1x128xf32>
    %cst_12 = arith.constant dense<0.000000e+00> : vector<128xf32>
    %40 = vector.multi_reduction <add>, %14, %cst_12 [0] : vector<16x128xf32> to vector<128xf32>
    %41 = vector.shape_cast %40 : vector<128xf32> to vector<1x128xf32>
    %42 = tpu.concatenate %37, %39, %41 in 0 : vector<1x128xf32>, vector<1x128xf32>, vector<1x128xf32> -> vector<3x128xf32>
    %c0_13 = arith.constant 0 : index
    %c0_14 = arith.constant 0 : index
    %c0_15 = arith.constant 0 : index
    %43 = vector.load %arg3[%c0_13, %c0_14, %c0_15] : memref<1x3x128xf32, #tpu.memory_space<vmem>>, vector<1x3x128xf32>
    %44 = vector.shape_cast %43 : vector<1x3x128xf32> to vector<3x128xf32>
    %45 = vector.shape_cast %42 : vector<3x128xf32> to vector<1x3x128xf32>
    tpu.vector_store %arg3[%c0_13, %c0_14, %c0_15], %45 {strides = array<i32>} : memref<1x3x128xf32, #tpu.memory_space<vmem>>, vector<1x3x128xf32>,
    return
  }
  func.func @transform_0(%arg0: i32) -> (i32, i32) {
    %c0_i32 = arith.constant 0 : i32
    %c0_i32_0 = arith.constant 0 : i32
    return %arg0, %c0_i32 : i32, i32
  }
  func.func @transform_1(%arg0: i32) -> (i32, i32) {
    %c0_i32 = arith.constant 0 : i32
    %c0_i32_0 = arith.constant 0 : i32
    return %arg0, %c0_i32 : i32, i32
  }
  func.func @transform_2(%arg0: i32) -> (i32, i32, i32) {
    %c0_i32 = arith.constant 0 : i32
    %c0_i32_0 = arith.constant 0 : i32
    %c0_i32_1 = arith.constant 0 : i32
    return %arg0, %c0_i32, %c0_i32_0 : i32, i32, i32
  }
}

</mosaic_0001>

<bundles_post_ra>
// kernel: tpu_custom_call.1
= control target key start
LH: loop header
LB: loop body
LE: loop exit
PB: predicated region body
PF: predicated region fallthrough
CT: control target
= control target key end

     0   :  { %7 = vsyncpa [#allocation3], 0  ;;  %s255_s0 = inlined_call_operand.hbm [shape: f32[16,128], index: 0, kind: input, shape index: {}]   ;;  %s256_s1 = inlined_call_operand.hbm [shape: f32[16,128], index: 1, kind: input, shape index: {}]   ;;  %s257_s2 = inlined_call_operand.vmem [shape: f32[1,3,128], index: 2, kind: output, shape index: {}]  }
   0x1   :  { %8 = vsyncpa [#allocation5], 0  ;;  %s208_s9 = smov [#allocation2]   ;;  %s160_s13 = scalar_lea.hbm %s255_s0, 256 }
   0x2   :  { %s14_s10 = sshll.u32 %s208_s9, 4  ;;  %p161_p0 = scmp.ne.s32.totalorder %s255_s0, %s160_s13  ;;  %s15_s10 = int_to_ptr.vmem [resolvable:$true] %s14_s10 }
   0x3   :  { %p164_p1 = scmp.lt.u32.totalorder %s160_s13, %s255_s0 }
   0x5   :  { %p166_p2 = pnand %p164_p1, %p161_p0 }
   0x7   :  { %169 = shalt.err (!%p166_p2)
}
   0x8   :  { %s170_s18 = scalar_lea.vmem %s15_s10, 256  ;;  %p175_p4 = scmp.lt.s32.totalorder %s15_s10, %s15_s10 }
   0x9   :  { %p171_p3 = scmp.ne.s32.totalorder %s15_s10, %s170_s18  ;;  %p176_p5 = scmp.lt.s32.totalorder %s170_s18, %s170_s18 }
   0xb   :  { %p177_p6 = por %p176_p5, %p175_p4 }
   0xd   :  { %p178_p7 = pnand %p177_p6, %p171_p3 }
   0xf   :  { %181 = shalt.err (!%p178_p7)
}
  0x10   :  { %s209_s19 = smov 128   ;;  %s210_s20 = smov 8  }
  0x11   :  { %20 = dma.hbm_to_vmem [thread:$0]  %s255_s0, 256, %s15_s10, [#allocation3], %s209_s19, %s209_s19, %s210_s20  }
  0x12   :  { %s211_s23 = smov [#allocation4]   ;;  %s182_s27 = scalar_lea.hbm %s256_s1, 256 }
  0x13   :  { %s26_s24 = sshll.u32 %s211_s23, 4  ;;  %p183_p8 = scmp.ne.s32.totalorder %s256_s1, %s182_s27  ;;  %s27_s24 = int_to_ptr.vmem [resolvable:$true] %s26_s24 }
  0x14   :  { %p186_p9 = scmp.lt.u32.totalorder %s182_s27, %s256_s1 }
  0x16   :  { %p188_p10 = pnand %p186_p9, %p183_p8 }
  0x18   :  { %191 = shalt.err (!%p188_p10)
}
  0x19   :  { %s192_s4 = scalar_lea.vmem %s27_s24, 256  ;;  %p197_p12 = scmp.lt.s32.totalorder %s27_s24, %s27_s24 }
  0x1a   :  { %p193_p11 = scmp.ne.s32.totalorder %s27_s24, %s192_s4  ;;  %p198_p13 = scmp.lt.s32.totalorder %s192_s4, %s192_s4 }
  0x1c   :  { %p199_p0 = por %p198_p13, %p197_p12 }
  0x1e   :  { %p200_p1 = pnand %p199_p0, %p193_p11 }
  0x20   :  { %203 = shalt.err (!%p200_p1)
}
  0x21   :  { %32 = dma.hbm_to_vmem [thread:$0]  %s256_s1, 256, %s27_s24, [#allocation5], %s209_s19, %s209_s19, %s210_s20  }
  0x22   :  { %204 = dma.done.wait [#allocation3], 256  }
  0x23   :  { %205 = vsyncadd [#allocation3], 4294967040 }
  0x24   :  { %206 = dma.done.wait [#allocation5], 256  }
  0x25   :  { %207 = vsyncadd [#allocation5], 4294967040  ;;  %v39_v0 = vld [vmem:[#allocation2] sm:$0xff]  ;;  %v40_v1 = vld [vmem:[#allocation2 + $0x8] sm:$0xff]  ;;  %v212_v22 = vmov 0.0   ;;  %vm122_vm4 = vcmask 1040384  }
  0x26   :  { %v133_v2 = vmul.f32 -1.442695, %v39_v0  ;;  %v134_v3 = vmul.f32 -1.442695, %v40_v1  ;;  %v41_v16 = vld [vmem:[#allocation4] sm:$0xff]  ;;  %v42_v17 = vld [vmem:[#allocation4 + $0x8] sm:$0xff] }
  0x27   :  { %vm59_vm0 = vcmp.eq.f32.partialorder %v41_v16, 1.0  ;;  %vm60_vm1 = vcmp.eq.f32.partialorder %v42_v17, 1.0  ;;  %v71_v18 = vsub.f32 1.0, %v41_v16  ;;  %v72_v19 = vsub.f32 1.0, %v42_v17 }
  0x28   :  { %144 = vpow2.f32 %v133_v2  ;;  %v135_v23 = vsel %vm59_vm0, 1.0, %v212_v22  ;;  %v136_v24 = vsel %vm60_vm1, 1.0, %v212_v22  ;;  %vm65_vm2 = vcmp.lt.f32.partialorder %v41_v16, 1.0 }
  0x29   :  { %146 = vpow2.f32 %v134_v3  ;;  %v73_v27 = vmul.f32 %v71_v18, %v71_v18  ;;  %v115_v29 = vadd.f32 %v136_v24, %v135_v23  ;;  %v74_v31 = vmul.f32 %v72_v19, %v72_v19 }
  0x2a   :  { %vm66_vm3 = vcmp.lt.f32.partialorder %v42_v17, 1.0  ;;  %v137_v46 = vsel %vm65_vm2, 1.0, %v212_v22  ;;  %vm124_vm5 = vcmask 1041408  }
  0x2b   :  { %v75_v38 = vmul.f32 %v73_v27, %v73_v27  ;;  %v116_v41 = vrot.slane %v115_v29, 4  ;;  %v76_v42 = vmul.f32 %v74_v31, %v74_v31  ;;  %v138_v49 = vsel %vm66_vm3, 1.0, %v212_v22 }
  0x2d   :  { %v117_v51 = vadd.f32 %v116_v41, %v115_v29 }
  0x2f   :  { %v118_v57 = vrot.slane %v117_v51, 2 }
  0x31   :  { %v119_v62 = vadd.f32 %v118_v57, %v117_v51 }
  0x32   :  { %v145_v4 = vpop.eup %144 }
  0x33   :  { %v147_v5 = vpop.eup %146  ;;  %v49_v6 = vadd.f32 1.0, %v145_v4  ;;  %v120_v2 = vrot.slane %v119_v62, 1 }
  0x34   :  { %v50_v7 = vadd.f32 1.0, %v147_v5 }
  0x35   :  { %148 = vrcp.f32 %v49_v6  ;;  %v121_v6 = vadd.f32 %v120_v2, %v119_v62 }
  0x36   :  { %150 = vrcp.f32 %v50_v7 }
  0x3f   :  { %v149_v8 = vpop.eup %148 }
  0x40   :  { %v151_v9 = vpop.eup %150  ;;  %v55_v10 = vmax.f32 %v149_v8, 0.0001 }
  0x41   :  { %v56_v11 = vmax.f32 %v151_v9, 0.0001 }
  0x42   :  { %v57_v12 = vmin.f32 %v55_v10, 0.9999 }
  0x43   :  { %v58_v13 = vmin.f32 %v56_v11, 0.9999 }
  0x44   :  { %152 = vlog2.f32 %v57_v12  ;;  %v81_v14 = vsub.f32 1.0, %v57_v12 }
  0x45   :  { %154 = vlog2.f32 %v58_v13  ;;  %v82_v15 = vsub.f32 1.0, %v58_v13 }
  0x46   :  { %156 = vlog2.f32 %v81_v14  ;;  %v83_v20 = vmul.f32 %v81_v14, %v81_v14 }
  0x47   :  { %158 = vlog2.f32 %v82_v15  ;;  %v84_v25 = vmul.f32 %v82_v15, %v82_v15 }
  0x4e   :  { %v153_v21 = vpop.eup %152 }
  0x4f   :  { %v155_v26 = vpop.eup %154  ;;  %v78_v28 = vmul.f32 0.6931472, %v153_v21 }
  0x50   :  { %v157_v30 = vpop.eup %156  ;;  %v80_v32 = vmul.f32 0.6931472, %v155_v26 }
  0x51   :  { %v159_v33 = vpop.eup %158  ;;  %v85_v34 = vmul.f32 %v83_v20, %v78_v28  ;;  %v90_v35 = vmul.f32 0.6931472, %v157_v30 }
  0x52   :  { %v86_v36 = vmul.f32 %v84_v25, %v80_v32  ;;  %v92_v37 = vmul.f32 0.6931472, %v159_v33 }
  0x53   :  { %v87_v39 = vmul.f32 %v135_v23, %v85_v34  ;;  %v93_v40 = vmul.f32 %v90_v35, %v57_v12 }
  0x54   :  { %v88_v43 = vmul.f32 %v136_v24, %v86_v36  ;;  %v94_v44 = vmul.f32 %v92_v37, %v58_v13 }
  0x55   :  { %v95_v45 = vmul.f32 %v93_v40, %v57_v12 }
  0x56   :  { %v96_v47 = vmul.f32 %v94_v44, %v58_v13  ;;  %v101_v48 = vadd.f32 %v88_v43, %v87_v39 }
  0x57   :  { %v97_v50 = vmul.f32 %v95_v45, %v75_v38 }
  0x58   :  { %v98_v52 = vmul.f32 %v96_v47, %v76_v42  ;;  %v102_v53 = vrot.slane %v101_v48, 4 }
  0x59   :  { %v99_v54 = vmul.f32 %v137_v46, %v97_v50 }
  0x5a   :  { %v100_v55 = vmul.f32 %v138_v49, %v98_v52  ;;  %v103_v56 = vadd.f32 %v102_v53, %v101_v48 }
  0x5c   :  { %v104_v58 = vrot.slane %v103_v56, 2  ;;  %v108_v59 = vadd.f32 %v100_v55, %v99_v54 }
  0x5e   :  { %v105_v60 = vadd.f32 %v104_v58, %v103_v56  ;;  %v109_v61 = vrot.slane %v108_v59, 4 }
  0x60   :  { %v110_v63 = vadd.f32 %v109_v61, %v108_v59  ;;  %v106_v0 = vrot.slane %v105_v60, 1 }
  0x62   :  { %v111_v1 = vrot.slane %v110_v63, 2  ;;  %v107_v4 = vadd.f32 %v106_v0, %v105_v60 }
  0x64   :  { %v112_v3 = vadd.f32 %v111_v1, %v110_v63 }
  0x66   :  { %v113_v5 = vrot.slane %v112_v3, 1 }
  0x68   :  { %v114_v7 = vadd.f32 %v113_v5, %v112_v3 }
  0x6a   :  { %v123_v8 = vsel %vm122_vm4, %v107_v4, %v114_v7 }
  0x6b   :  { %v125_v9 = vsel %vm124_vm5, %v123_v8, %v121_v6 }
  0x6c   :  { %126 = vst [vmem:[%s257_s2] sm:$0x7] %v125_v9 }
  0x6d   :  { %131 = vsyncpa [#allocation3], 1 }
  0x6e   :  { %132 = vsyncpa [#allocation5], 1 }

</bundles_post_ra>
